<compile_context>
chip_gen: v7x
topology: tpu7x:2x2x1
jax: 0.10.0
libtpu: 0.0.40
codegen_flags: <defaults>
</compile_context>

<pallas_src>
import jax
import jax.numpy as jnp
from jax import lax
from jax.experimental import pallas as pl
from jax.experimental.pallas import tpu as pltpu


def cat_loss_kernel(mean_ref, var_ref, target_ref, loss_ref):
    mean = mean_ref[...]          # (TB, C)
    var = var_ref[...]            # (TB, C, C)
    target = target_ref[...]      # (TB, C)

    # Numerically-stable logsumexp over the class axis (matches torch.logsumexp).
    m = jnp.max(mean, axis=-1, keepdims=True)                                   # (TB, 1)
    lse = m + jnp.log(jnp.sum(jnp.exp(mean - m), axis=-1, keepdims=True))       # (TB, 1)

    # Softmax probabilities.
    p = jnp.exp(mean - lse)                                                     # (TB, C)

    # Fused single pass over var:
    #   corr_i = sum_j var_ij * (delta_ij - p_j) = diag(var)_i - (var @ p)_i
    #   pTDiagVar - pTVarp = sum_i p_i * corr_i
    C = var.shape[-1]
    eye = (lax.broadcasted_iota(jnp.int32, (C, C), 0)
           == lax.broadcasted_iota(jnp.int32, (C, C), 1)).astype(var.dtype)     # (C, C)
    corr = jnp.sum(var * (eye[None, :, :] - p[:, None, :]), axis=-1)            # (TB, C)

    # Second-order corrected <logsumexp(y)>.
    lse_corr = lse + 0.5 * jnp.sum(p * corr, axis=-1, keepdims=True)            # (TB, 1)

    # <logsoftmax(y)> and the categorical loss.
    lsm = mean - lse_corr                                                       # (TB, C)
    loss = jnp.sum(target * lsm, axis=-1, keepdims=True)                        # (TB, 1)

    # Store as a lane-dense row (1, 1, TB) instead of a masked last-dim-1 column.
    loss_ref[...] = loss.reshape(1, 1, -1)


def _round_up(x, m):
    return (x + m - 1) // m * m


def categorical_loss(mean, var, target):
    B, C = mean.shape
    dtype = mean.dtype

    # --- batch tiling --------------------------------------------------------
    # Keep one var buffer around <= ~4 MiB (double-buffered ~8 MiB) so tiles are
    # big enough to amortize the ~0.35 us/grid-step overhead but fit comfortably
    # in scoped VMEM on all generations (v7x: 64 MiB physical).
    tb_budget = max(8, (4 << 20) // (C * C * 4))
    tb_budget = min(tb_budget, 4096)
    m8 = _round_up(max(B, 1), 8) // 8
    # Largest multiple of 8 within budget that divides the 8-padded batch, so we
    # never pad by more than 7 rows (jnp.pad copies HBM; keep it rare/small).
    d = max(k for k in range(1, m8 + 1) if m8 % k == 0 and 8 * k <= tb_budget)
    tb = 8 * d
    b_pad = 8 * m8
    grid = b_pad // tb

    if b_pad != B:
        mean = jnp.pad(mean, ((0, b_pad - B), (0, 0)))
        var = jnp.pad(var, ((0, b_pad - B), (0, 0), (0, 0)))
        target = jnp.pad(target, ((0, b_pad - B), (0, 0)))
        # Zero padding is benign: lse = log(C), p = 1/C, var = 0, target = 0 -> loss 0.

    loss3d = pl.pallas_call(
        cat_loss_kernel,
        out_shape=jax.ShapeDtypeStruct((grid, 1, tb), dtype),
        grid_spec=pltpu.PrefetchScalarGridSpec(
            num_scalar_prefetch=0,
            grid=(grid,),
            in_specs=[
                pl.BlockSpec((tb, C), lambda i: (i, 0)),
                pl.BlockSpec((tb, C, C), lambda i: (i, 0, 0)),
                pl.BlockSpec((tb, C), lambda i: (i, 0)),
            ],
            out_specs=pl.BlockSpec((1, 1, tb), lambda i: (i, 0, 0)),
        ),
        compiler_params=pltpu.CompilerParams(
            dimension_semantics=("parallel",),   # shards batch tiles across v7x's 2 TCs
            vmem_limit_bytes=48 << 20,           # > v5e 16 MiB / v6e 32 MiB defaults, < v7x 64 MiB physical
        ),
    )(mean, var, target)

    return loss3d.reshape(-1)[:B]
    # TODO(synk): `verbose=True` in the PyTorch module only prints lse.mean(); it is a
    # host-side side effect with no impact on the returned value, so it is omitted.
    # Note: for C << 128, a lane-dense (B, C*C) var layout would raise VPU lane
    # utilization, but the kernel stays HBM-streaming bound, so it is not applied here.


if __name__ == "__main__":
    B, C = 8, 16
    key = jax.random.PRNGKey(0)
    k1, k2, k3 = jax.random.split(key, 3)

    mean = jax.random.normal(k1, (B, C), dtype=jnp.float32)
    a = jax.random.normal(k2, (B, C, C), dtype=jnp.float32) * 0.1
    var = jnp.einsum("bij,bkj->bik", a, a)  # symmetric PSD covariance
    target = jax.nn.softmax(jax.random.normal(k3, (B, C), dtype=jnp.float32), axis=-1)

    loss = categorical_loss(mean, var, target)
    jax.block_until_ready(loss)

    # Pure-JAX reference for a sanity check.
    lse = jax.nn.logsumexp(mean, axis=-1, keepdims=True)
    p = jnp.exp(mean - lse)
    diag = jnp.diagonal(var, axis1=-2, axis2=-1)
    pTDiagVar = jnp.sum(p * diag, axis=-1, keepdims=True)
    pTVarp = jnp.einsum("bi,bij,bj->b", p, var, p)[:, None]
    lsm_ref = mean - (lse + 0.5 * (pTDiagVar - pTVarp))
    loss_ref = jnp.sum(target * lsm_ref, axis=-1)

    assert loss.shape == (B,)
    assert jnp.allclose(loss, loss_ref, atol=1e-5, rtol=1e-5), (loss, loss_ref)
    print("KERNEL_OK")
</pallas_src>

<mosaic_0001>
module attributes {stable_mosaic.version = 11 : i64} {
  func.func @cat_loss_kernel(%arg0: i32, %arg1: memref<8x16xf32, #tpu.memory_space<vmem>>, %arg2: memref<8x16x16xf32, #tpu.memory_space<vmem>>, %arg3: memref<8x16xf32, #tpu.memory_space<vmem>>, %arg4: memref<1x1x8xf32, #tpu.memory_space<vmem>>) attributes {dimension_semantics = [#tpu.dimension_semantics<parallel>], iteration_bounds = array<i64: 1>, scalar_prefetch = 0 : i64, scratch_operands = 0 : i64, tpu.core_type = #tpu.core_type<tc>, window_params = [{transform_indices = @transform_0, window_bounds = array<i64: 8, 16>}, {transform_indices = @transform_1, window_bounds = array<i64: 8, 16, 16>}, {transform_indices = @transform_2, window_bounds = array<i64: 8, 16>}, {transform_indices = @transform_3, window_bounds = array<i64: 1, 1, 8>}]} {
    %c0 = arith.constant 0 : index
    %c0_0 = arith.constant 0 : index
    %0 = vector.load %arg1[%c0, %c0_0] : memref<8x16xf32, #tpu.memory_space<vmem>>, vector<8x16xf32>
    %c0_1 = arith.constant 0 : index
    %c0_2 = arith.constant 0 : index
    %c0_3 = arith.constant 0 : index
    %1 = vector.load %arg2[%c0_1, %c0_2, %c0_3] : memref<8x16x16xf32, #tpu.memory_space<vmem>>, vector<8x16x16xf32>
    %c0_4 = arith.constant 0 : index
    %c0_5 = arith.constant 0 : index
    %2 = vector.load %arg3[%c0_4, %c0_5] : memref<8x16xf32, #tpu.memory_space<vmem>>, vector<8x16xf32>
    %cst = arith.constant dense<0xFF800000> : vector<8xf32>
    %3 = vector.multi_reduction <maximumf>, %0, %cst [1] : vector<8x16xf32> to vector<8xf32>
    %4 = vector.shape_cast %3 : vector<8xf32> to vector<8x1xf32>
    %5 = vector.broadcast %4 : vector<8x1xf32> to vector<8x16xf32>
    %6 = arith.subf %0, %5 : vector<8x16xf32>
    %7 = math.exp %6 : vector<8x16xf32>
    %cst_6 = arith.constant dense<0.000000e+00> : vector<8xf32>
    %8 = vector.multi_reduction <add>, %7, %cst_6 [1] : vector<8x16xf32> to vector<8xf32>
    %9 = vector.shape_cast %8 : vector<8xf32> to vector<8x1xf32>
    %10 = math.log %9 : vector<8x1xf32>
    %11 = arith.addf %4, %10 : vector<8x1xf32>
    %12 = vector.broadcast %11 : vector<8x1xf32> to vector<8x16xf32>
    %13 = arith.subf %0, %12 : vector<8x16xf32>
    %14 = math.exp %13 : vector<8x16xf32>
    %15 = tpu.iota {dimensions = array<i32: 0>} : vector<16x16xi32>
    %16 = tpu.iota {dimensions = array<i32: 1>} : vector<16x16xi32>
    %17 = arith.cmpi eq, %15, %16 : vector<16x16xi32>
    %18 = arith.extui %17 : vector<16x16xi1> to vector<16x16xi32>
    %19 = arith.sitofp %18 : vector<16x16xi32> to vector<16x16xf32>
    %20 = vector.shape_cast %19 : vector<16x16xf32> to vector<1x16x16xf32>
    %21 = vector.shape_cast %14 : vector<8x16xf32> to vector<8x1x16xf32>
    %22 = vector.broadcast %20 : vector<1x16x16xf32> to vector<8x16x16xf32>
    %23 = vector.broadcast %21 : vector<8x1x16xf32> to vector<8x16x16xf32>
    %24 = arith.subf %22, %23 : vector<8x16x16xf32>
    %25 = arith.mulf %1, %24 : vector<8x16x16xf32>
    %cst_7 = arith.constant dense<0.000000e+00> : vector<8x16xf32>
    %26 = vector.multi_reduction <add>, %25, %cst_7 [2] : vector<8x16x16xf32> to vector<8x16xf32>
    %27 = arith.mulf %14, %26 : vector<8x16xf32>
    %cst_8 = arith.constant dense<0.000000e+00> : vector<8xf32>
    %28 = vector.multi_reduction <add>, %27, %cst_8 [1] : vector<8x16xf32> to vector<8xf32>
    %29 = vector.shape_cast %28 : vector<8xf32> to vector<8x1xf32>
    %cst_9 = arith.constant 5.000000e-01 : f32
    %30 = vector.broadcast %cst_9 : f32 to vector<8x1xf32>
    %31 = arith.mulf %30, %29 : vector<8x1xf32>
    %32 = arith.addf %11, %31 : vector<8x1xf32>
    %33 = vector.broadcast %32 : vector<8x1xf32> to vector<8x16xf32>
    %34 = arith.subf %0, %33 : vector<8x16xf32>
    %35 = arith.mulf %2, %34 : vector<8x16xf32>
    %cst_10 = arith.constant dense<0.000000e+00> : vector<8xf32>
    %36 = vector.multi_reduction <add>, %35, %cst_10 [1] : vector<8x16xf32> to vector<8xf32>
    %37 = vector.shape_cast %36 : vector<8xf32> to vector<8x1xf32>
    %38 = vector.shape_cast %37 : vector<8x1xf32> to vector<1x1x8xf32>
    %c0_11 = arith.constant 0 : index
    %c0_12 = arith.constant 0 : index
    %c0_13 = arith.constant 0 : index
    %39 = vector.load %arg4[%c0_11, %c0_12, %c0_13] : memref<1x1x8xf32, #tpu.memory_space<vmem>>, vector<1x1x8xf32>
    tpu.vector_store %arg4[%c0_11, %c0_12, %c0_13], %38 {strides = array<i32>} : memref<1x1x8xf32, #tpu.memory_space<vmem>>, vector<1x1x8xf32>,
    return
  }
  func.func @transform_0(%arg0: i32) -> (i32, i32) {
    %c0_i32 = arith.constant 0 : i32
    %c0_i32_0 = arith.constant 0 : i32
    return %arg0, %c0_i32 : i32, i32
  }
  func.func @transform_1(%arg0: i32) -> (i32, i32, i32) {
    %c0_i32 = arith.constant 0 : i32
    %c0_i32_0 = arith.constant 0 : i32
    %c0_i32_1 = arith.constant 0 : i32
    return %arg0, %c0_i32, %c0_i32_0 : i32, i32, i32
  }
  func.func @transform_2(%arg0: i32) -> (i32, i32) {
    %c0_i32 = arith.constant 0 : i32
    %c0_i32_0 = arith.constant 0 : i32
    return %arg0, %c0_i32 : i32, i32
  }
  func.func @transform_3(%arg0: i32) -> (i32, i32, i32) {
    %c0_i32 = arith.constant 0 : i32
    %c0_i32_0 = arith.constant 0 : i32
    %c0_i32_1 = arith.constant 0 : i32
    return %arg0, %c0_i32, %c0_i32_0 : i32, i32, i32
  }
}

</mosaic_0001>

<bundles_post_ra>
// kernel: tpu_custom_call.1
= control target key start
LH: loop header
LB: loop body
LE: loop exit
PB: predicated region body
PF: predicated region fallthrough
CT: control target
= control target key end

     0   :  { %8 = vsyncpa [#allocation3], 0  ;;  %s692_s0 = inlined_call_operand.hbm [shape: f32[8,16], index: 0, kind: input, shape index: {}]   ;;  %s693_s1 = inlined_call_operand.hbm [shape: f32[8,16,16], index: 1, kind: input, shape index: {}]   ;;  %s694_s2 = inlined_call_operand.hbm [shape: f32[8,16], index: 2, kind: input, shape index: {}]   ;;  %s695_s3 = inlined_call_operand.hbm [shape: f32[1,1,8], index: 3, kind: output, shape index: {}]  }
   0x1   :  { %9 = vsyncpa [#allocation6], 0 }
   0x2   :  { %10 = vsyncpa [#allocation4], 0  ;;  %s517_s12 = smov [#allocation5]   ;;  %s423_s16 = scalar_lea.hbm %s693_s1, 2048 }
   0x3   :  { %s26_s13 = sshll.u32 %s517_s12, 4  ;;  %p424_p0 = scmp.ne.s32.totalorder %s693_s1, %s423_s16  ;;  %s27_s13 = int_to_ptr.vmem [resolvable:$true] %s26_s13 }
   0x4   :  { %p427_p1 = scmp.lt.u32.totalorder %s423_s16, %s693_s1 }
   0x6   :  { %p429_p2 = pnand %p427_p1, %p424_p0 }
   0x8   :  { %432 = shalt.err (!%p429_p2)
}
   0x9   :  { %s433_s21 = scalar_lea.vmem %s27_s13, 2048  ;;  %p438_p4 = scmp.lt.s32.totalorder %s27_s13, %s27_s13 }
   0xa   :  { %p434_p3 = scmp.ne.s32.totalorder %s27_s13, %s433_s21  ;;  %p439_p5 = scmp.lt.s32.totalorder %s433_s21, %s433_s21 }
   0xc   :  { %p440_p6 = por %p439_p5, %p438_p4 }
   0xe   :  { %p441_p7 = pnand %p440_p6, %p434_p3 }
  0x10   :  { %444 = shalt.err (!%p441_p7)
}
  0x11   :  { %s518_s22 = smov 128   ;;  %s519_s23 = smov 8  }
  0x12   :  { %32 = dma.hbm_to_vmem [thread:$0]  %s693_s1, 2048, %s27_s13, [#allocation6], %s518_s22, %s518_s22, %s519_s23  }
  0x13   :  { %s520_s26 = smov [#allocation2]   ;;  %s521_s28 = smov [#allocation7]  }
  0x14   :  { %s17_s27 = sshll.u32 %s520_s26, 4  ;;  %s39_s29 = sshll.u32 %s521_s28, 4  ;;  %s18_s27 = int_to_ptr.vmem [resolvable:$true] %s17_s27  ;;  %s40_s29 = int_to_ptr.vmem [resolvable:$true] %s39_s29 }
  0x15   :  { %s445_s5 = scalar_lea.hbm %s692_s0, 128 }
  0x16   :  { %p446_p8 = scmp.ne.s32.totalorder %s692_s0, %s445_s5  ;;  %p449_p9 = scmp.lt.u32.totalorder %s445_s5, %s692_s0 }
  0x18   :  { %p451_p10 = pnand %p449_p9, %p446_p8 }
  0x1a   :  { %454 = shalt.err (!%p451_p10)
}
  0x1b   :  { %s455_s1 = scalar_lea.vmem %s18_s27, 128  ;;  %p460_p12 = scmp.lt.s32.totalorder %s18_s27, %s18_s27 }
  0x1c   :  { %p456_p11 = scmp.ne.s32.totalorder %s18_s27, %s455_s1  ;;  %p461_p13 = scmp.lt.s32.totalorder %s455_s1, %s455_s1 }
  0x1e   :  { %p462_p0 = por %p461_p13, %p460_p12 }
  0x20   :  { %p463_p1 = pnand %p462_p0, %p456_p11 }
  0x22   :  { %466 = shalt.err (!%p463_p1)
}
  0x23   :  { %20 = dma.hbm_to_vmem [thread:$0]  %s692_s0, 128, %s18_s27, [#allocation3]  }
  0x24   :  { %s467_s14 = scalar_lea.hbm %s694_s2, 128 }
  0x25   :  { %p468_p2 = scmp.ne.s32.totalorder %s694_s2, %s467_s14  ;;  %p471_p3 = scmp.lt.u32.totalorder %s467_s14, %s694_s2 }
  0x27   :  { %p473_p4 = pnand %p471_p3, %p468_p2 }
  0x29   :  { %476 = shalt.err (!%p473_p4)
}
  0x2a   :  { %s477_s19 = scalar_lea.vmem %s40_s29, 128  ;;  %p482_p6 = scmp.lt.s32.totalorder %s40_s29, %s40_s29 }
  0x2b   :  { %p478_p5 = scmp.ne.s32.totalorder %s40_s29, %s477_s19  ;;  %p483_p7 = scmp.lt.s32.totalorder %s477_s19, %s477_s19 }
  0x2d   :  { %p484_p8 = por %p483_p7, %p482_p6 }
  0x2f   :  { %p485_p9 = pnand %p484_p8, %p478_p5 }
  0x31   :  { %488 = shalt.err (!%p485_p9)
}
  0x32   :  { %42 = dma.hbm_to_vmem [thread:$0]  %s694_s2, 128, %s40_s29, [#allocation6]  }
  0x33   :  { %511 = dma.done.wait [#allocation3], 128  }
  0x34   :  { %512 = vsyncadd [#allocation3], 4294967168 }
  0x35   :  { %513 = dma.done.wait [#allocation6], 2176  }
  0x36   :  { %514 = vsyncadd [#allocation6], 4294965120  ;;  %vm70_vm0 = vcmask 130048   ;;  %v581_v0 = vld [vmem:[#allocation2] sm:$0xff]  ;;  %v86_v13 = vlaneseq  ;;  %v522_v14 = vmov 1966171168  }
  0x37   :  { %v71_v1 = vsel %vm70_vm0, %v581_v0, -inf  ;;  %v100_v15 = vunpack.c.l.s4 %v522_v14  ;;  %v523_v28 = vmov 0.0   ;;  %v53_v35 = vld [vmem:[#allocation5] sm:$0xff]  ;;  %v55_v40 = vld [vmem:[#allocation5 + $0x10] sm:$0xff]  ;;  %v54_v41 = vld [vmem:[#allocation5 + $0x8] sm:$0xff]  ;;  %vm292_vm3 = vcmask 130112  }
  0x38   :  { %72 = vmax.xlane.f32.xlu0 %v71_v1  ;;  %v591_v16 = vshrl.u32 %v86_v13, 7  ;;  %v593_v18 = vand.u32 127, %v86_v13  ;;  %v57_v48 = vld [vmem:[#allocation5 + $0x20] sm:$0xff]  ;;  %v56_v53 = vld [vmem:[#allocation5 + $0x18] sm:$0xff]  ;;  %v58_v1 = vld [vmem:[#allocation5 + $0x28] sm:$0xff]  ;;  %vm357_vm4 = vcmask 1041409  }
  0x39   :  { %v101_v17 = vunpack.c.0.s8 %v100_v15  ;;  %v61_v57 = vld [vmem:[#allocation5 + $0x40] sm:$0xff]  ;;  %vm359_vm5 = vcmask 1042434   ;;  %vm361_vm6 = vcmask 1043459   ;;  %vm363_vm7 = vcmask 1044484   ;;  %s524_s2 = smov [#allocation8]  }
  0x3a   :  { %v88_v20 = vadd.s32 8, %v591_v16  ;;  %vm91_vm1 = vcmp.eq.s32.totalorder %v591_v16, %v593_v18  ;;  %v603_v23 = vsub.s32 0, %v591_v16  ;;  %vm365_vm8 = vcmask 1045509   ;;  %s397_s21 = sshll.u32 %s524_s2, 4  ;;  %s398_s21 = int_to_ptr.vmem [resolvable:$true] %s397_s21 }
  0x3b   :  { %v104_v19 = vsub.s32 %v101_v17, %v591_v16  ;;  %v608_v29 = vsel %vm91_vm1, 1.0, %v523_v28  ;;  %vm367_vm9 = vcmask 1046534   ;;  %vm369_vm10 = vcmask 1047559   ;;  %s489_s22 = scalar_lea.vmem %s398_s21, 16  ;;  %s493_s23 = scalar_lea.vmem %s398_s21, 32 }
  0x3c   :  { %vm92_vm2 = vcmp.eq.s32.totalorder %v88_v20, %v593_v18  ;;  %vm389_vm11 = vcmask 57344   ;;  %p490_p10 = scmp.ne.s32.totalorder %s398_s21, %s489_s22  ;;  %p494_p11 = scmp.lt.s32.totalorder %s398_s21, %s398_s21 }
  0x3d   :  { %v610_v30 = vsel %vm92_vm2, 1.0, %v523_v28  ;;  %p495_p12 = scmp.lt.s32.totalorder %s493_s23, %s489_s22 }
  0x3f   :  { %p496_p13 = por %p495_p12, %p494_p11 }
  0x41   :  { %p497_p0 = pnand %p496_p13, %p490_p10 }
  0xc5   :  { %v73_v2 = vpop.xlane.xlu0 %72 }
  0xc6   :  { %v74_v3 = vsub.f32 %v581_v0, %v73_v2 }
  0xc8   :  { %v75_v4 = vmul.f32 1.442695, %v74_v3 }
  0xca   :  { %417 = vpow2.f32 %v75_v4 }
  0xd4   :  { %v418_v5 = vpop.eup %417 }
  0xd5   :  { %v77_v6 = vsel %vm70_vm0, %v418_v5, 0.0 }
  0xd6   :  { %78 = vadd.xlane.f32.xlu0 %v77_v6  ;;  %v59_v6 = vld [vmem:[#allocation5 + $0x30] sm:$0xff] }
 0x163   :  { %v79_v7 = vpop.xlane.xlu0 %78 }
 0x164   :  { %419 = vlog2.f32 %v79_v7 }
 0x16e   :  { %v420_v8 = vpop.eup %419 }
 0x16f   :  { %v81_v9 = vmul.f32 0.6931472, %v420_v8 }
 0x171   :  { %v587_v10 = vadd.f32 %v81_v9, %v73_v2 }
 0x173   :  { %v83_v11 = vsub.f32 %v581_v0, %v587_v10 }
 0x175   :  { %v84_v12 = vmul.f32 1.442695, %v83_v11 }
 0x177   :  { %421 = vpow2.f32 %v84_v12  ;;  %v62_v12 = vld [vmem:[#allocation5 + $0x48] sm:$0xff] }
 0x181   :  { %v597_v21 = vpop.eup %421 }
 0x182   :  { %v105_v22 = vrot.slane %v597_v21, %v104_v19  ;;  %v98_v24 = vcombine.high %v597_v21, %v597_v21 }
 0x184   :  { %v121_v25 = vrot.slane %v105_v22, %v104_v19  ;;  %v113_v26 = vcombine.high %v105_v22, %v105_v22  ;;  %v112_v27 = vrot.slane %v98_v24, %v104_v19 }
 0x186   :  { %v150_v31 = vrot.slane %v121_v25, %v603_v23  ;;  %v135_v32 = vrot.slane %v113_v26, %v104_v19  ;;  %v143_v33 = vcombine.high %v121_v25, %v121_v25  ;;  %v128_v34 = vrot.slane %v112_v27, %v104_v19  ;;  %v60_v25 = vld [vmem:[#allocation5 + $0x38] sm:$0xff] }
 0x187   :  { %v114_v43 = vcombine.high %v112_v27, %v112_v27 }
 0x188   :  { %v187_v36 = vsub.f32 %v608_v29, %v150_v31  ;;  %v154_v37 = vrot.slane %v135_v32, %v603_v23  ;;  %v188_v38 = vsub.f32 %v610_v30, %v150_v31  ;;  %v158_v39 = vrot.slane %v143_v33, %v603_v23 }
 0x189   :  { %v166_v42 = vrot.slane %v128_v34, %v603_v23  ;;  %v145_v47 = vcombine.high %v135_v32, %v135_v32  ;;  %v142_v59 = vrot.slane %v114_v43, %v104_v19  ;;  %v144_v5 = vcombine.high %v128_v34, %v128_v34  ;;  %v63_v19 = vld [vmem:[#allocation5 + $0x50] sm:$0xff]  ;;  %v65_v32 = vld [vmem:[#allocation5 + $0x60] sm:$0xff]  ;;  %v66_v43 = vld [vmem:[#allocation5 + $0x68] sm:$0xff] }
 0x18a   :  { %v203_v44 = vmul.f32 %v187_v36, %v53_v35  ;;  %v189_v45 = vsub.f32 %v608_v29, %v154_v37  ;;  %v191_v46 = vsub.f32 %v608_v29, %v158_v39  ;;  %v204_v51 = vmul.f32 %v188_v38, %v54_v41  ;;  %v64_v36 = vld [vmem:[#allocation5 + $0x58] sm:$0xff] }
 0x18b   :  { %v190_v52 = vsub.f32 %v610_v30, %v154_v37  ;;  %v195_v54 = vsub.f32 %v608_v29, %v166_v42  ;;  %v162_v58 = vrot.slane %v145_v47, %v603_v23  ;;  %v192_v62 = vsub.f32 %v610_v30, %v158_v39 }
 0x18c   :  { %v219_v49 = vsel %vm70_vm0, %v203_v44, 0.0  ;;  %v205_v50 = vmul.f32 %v189_v45, %v55_v40  ;;  %v207_v56 = vmul.f32 %v191_v46, %v57_v48  ;;  %v222_v60 = vsel %vm70_vm0, %v204_v51, 0.0  ;;  %v67_v40 = vld [vmem:[#allocation5 + $0x70] sm:$0xff] }
 0x18d   :  { %220 = vadd.xlane.f32.xlu1 %v219_v49  ;;  %v206_v61 = vmul.f32 %v190_v52, %v56_v53  ;;  %v211_v63 = vmul.f32 %v195_v54, %v61_v57  ;;  %v193_v3 = vsub.f32 %v608_v29, %v162_v58  ;;  %v170_v4 = vrot.slane %v142_v59, %v603_v23 }
 0x18e   :  { %v225_v55 = vsel %vm70_vm0, %v205_v50, 0.0  ;;  %v231_v2 = vsel %vm70_vm0, %v207_v56, 0.0  ;;  %v208_v8 = vmul.f32 %v192_v62, %v58_v1  ;;  %v196_v9 = vsub.f32 %v610_v30, %v166_v42 }
 0x18f   :  { %226 = vadd.xlane.f32.xlu0 %v225_v55  ;;  %v228_v7 = vsel %vm70_vm0, %v206_v61, 0.0  ;;  %v243_v11 = vsel %vm70_vm0, %v211_v63, 0.0  ;;  %v209_v13 = vmul.f32 %v193_v3, %v59_v6  ;;  %v197_v14 = vsub.f32 %v608_v29, %v170_v4 }
 0x190   :  { %v174_v15 = vrot.slane %v144_v5, %v603_v23  ;;  %v146_v17 = vcombine.high %v142_v59, %v142_v59  ;;  %v234_v20 = vsel %vm70_vm0, %v208_v8, 0.0  ;;  %v212_v22 = vmul.f32 %v196_v9, %v62_v12 }
 0x191   :  { %223 = vadd.xlane.f32.xlu1 %v222_v60  ;;  %v194_v24 = vsub.f32 %v610_v30, %v162_v58  ;;  %v237_v26 = vsel %vm70_vm0, %v209_v13, 0.0  ;;  %v213_v27 = vmul.f32 %v197_v14, %v63_v19  ;;  %v198_v35 = vsub.f32 %v610_v30, %v170_v4 }
 0x192   :  { %v199_v28 = vsub.f32 %v608_v29, %v174_v15  ;;  %v178_v31 = vrot.slane %v146_v17, %v603_v23  ;;  %v246_v33 = vsel %vm70_vm0, %v212_v22, 0.0  ;;  %v200_v23 = vsub.f32 %v610_v30, %v174_v15 }
 0x193   :  { %232 = vadd.xlane.f32.xlu0 %v231_v2  ;;  %v210_v34 = vmul.f32 %v194_v24, %v60_v25  ;;  %v249_v37 = vsel %vm70_vm0, %v213_v27, 0.0  ;;  %v214_v42 = vmul.f32 %v198_v35, %v64_v36  ;;  %v287_v60 = vadd.s32 4294967288, %v593_v18 }
 0x194   :  { %v215_v38 = vmul.f32 %v199_v28, %v65_v32  ;;  %v201_v39 = vsub.f32 %v608_v29, %v178_v31  ;;  %v216_v47 = vmul.f32 %v200_v23, %v66_v43  ;;  %v202_v48 = vsub.f32 %v610_v30, %v178_v31  ;;  %v68_v29 = vld [vmem:[#allocation5 + $0x78] sm:$0xff] }
 0x195   :  { %229 = vadd.xlane.f32.xlu1 %v228_v7  ;;  %v240_v41 = vsel %vm70_vm0, %v210_v34, 0.0  ;;  %v252_v46 = vsel %vm70_vm0, %v214_v42, 0.0  ;;  %v290_v63 = vsub.s32 %v287_v60, %v591_v16  ;;  %v656_v2 = vsub.s32 %v593_v18, %v591_v16 }
 0x196   :  { %v255_v44 = vsel %vm70_vm0, %v215_v38, 0.0  ;;  %v217_v45 = vmul.f32 %v201_v39, %v67_v40  ;;  %v258_v50 = vsel %vm70_vm0, %v216_v47, 0.0  ;;  %v218_v51 = vmul.f32 %v202_v48, %v68_v29  ;;  %v69_v48 = vld [vmem:[#allocation7] sm:$0xff] }
 0x197   :  { %244 = vadd.xlane.f32.xlu0 %v243_v11 }
 0x198   :  { %v261_v49 = vsel %vm70_vm0, %v217_v45, 0.0  ;;  %v264_v52 = vsel %vm70_vm0, %v218_v51, 0.0 }
 0x199   :  { %235 = vadd.xlane.f32.xlu1 %v234_v20 }
 0x19b   :  { %238 = vadd.xlane.f32.xlu0 %v237_v26 }
 0x19d   :  { %247 = vadd.xlane.f32.xlu1 %v246_v33 }
 0x19f   :  { %250 = vadd.xlane.f32.xlu0 %v249_v37 }
 0x1a1   :  { %241 = vadd.xlane.f32.xlu1 %v240_v41 }
 0x1a3   :  { %256 = vadd.xlane.f32.xlu0 %v255_v44 }
 0x1a5   :  { %253 = vadd.xlane.f32.xlu1 %v252_v46 }
 0x1a7   :  { %262 = vadd.xlane.f32.xlu0 %v261_v49 }
 0x1a9   :  { %259 = vadd.xlane.f32.xlu1 %v258_v50 }
 0x1ad   :  { %265 = vadd.xlane.f32.xlu1 %v264_v52 }
 0x21a   :  { %v221_v53 = vpop.xlane.xlu1 %220 }
 0x21b   :  { %v286_v12 = vrot.slane %v221_v53, %v656_v2 }
 0x21c   :  { %v227_v54 = vpop.xlane.xlu0 %226 }
 0x21d   :  { %v297_v5 = vrot.slane %v227_v54, %v656_v2 }
 0x21e   :  { %v224_v55 = vpop.xlane.xlu1 %223 }
 0x21f   :  { %v291_v6 = vrot.slane %v224_v55, %v290_v63 }
 0x220   :  { %v233_v56 = vpop.xlane.xlu0 %232 }
 0x221   :  { %v306_v8 = vrot.slane %v233_v56, %v656_v2  ;;  %v293_v18 = vsel %vm292_vm3, %v291_v6, %v286_v12 }
 0x222   :  { %v230_v57 = vpop.xlane.xlu1 %229 }
 0x223   :  { %v301_v3 = vrot.slane %v230_v57, %v290_v63 }
 0x224   :  { %v245_v58 = vpop.xlane.xlu0 %244 }
 0x225   :  { %v302_v13 = vsel %vm292_vm3, %v301_v3, %v297_v5  ;;  %v324_v27 = vrot.slane %v245_v58, %v656_v2 }
 0x226   :  { %v236_v59 = vpop.xlane.xlu1 %235  ;;  %v358_v19 = vsel %vm357_vm4, %v302_v13, %v293_v18 }
 0x227   :  { %v310_v4 = vrot.slane %v236_v59, %v290_v63 }
 0x228   :  { %v239_v30 = vpop.xlane.xlu0 %238 }
 0x229   :  { %v315_v14 = vrot.slane %v239_v30, %v656_v2  ;;  %v311_v16 = vsel %vm292_vm3, %v310_v4, %v306_v8 }
 0x22a   :  { %v248_v61 = vpop.xlane.xlu1 %247  ;;  %v360_v24 = vsel %vm359_vm5, %v311_v16, %v358_v19 }
 0x22b   :  { %v328_v20 = vrot.slane %v248_v61, %v290_v63 }
 0x22c   :  { %v251_v62 = vpop.xlane.xlu0 %250 }
 0x22d   :  { %v333_v25 = vrot.slane %v251_v62, %v656_v2  ;;  %v329_v34 = vsel %vm292_vm3, %v328_v20, %v324_v27 }
 0x22e   :  { %v242_v1 = vpop.xlane.xlu1 %241 }
 0x22f   :  { %v319_v7 = vrot.slane %v242_v1, %v290_v63 }
 0x230   :  { %v257_v9 = vpop.xlane.xlu0 %256 }
 0x231   :  { %v320_v15 = vsel %vm292_vm3, %v319_v7, %v315_v14  ;;  %v342_v31 = vrot.slane %v257_v9, %v656_v2 }
 0x232   :  { %v254_v11 = vpop.xlane.xlu1 %253  ;;  %v362_v28 = vsel %vm361_vm6, %v320_v15, %v360_v24 }
 0x233   :  { %v337_v17 = vrot.slane %v254_v11, %v290_v63  ;;  %v364_v37 = vsel %vm363_vm7, %v329_v34, %v362_v28 }
 0x234   :  { %v263_v32 = vpop.xlane.xlu0 %262 }
 0x235   :  { %v338_v33 = vsel %vm292_vm3, %v337_v17, %v333_v25  ;;  %v351_v38 = vrot.slane %v263_v32, %v656_v2 }
 0x236   :  { %v260_v22 = vpop.xlane.xlu1 %259  ;;  %v366_v40 = vsel %vm365_vm8, %v338_v33, %v364_v37 }
 0x237   :  { %v346_v26 = vrot.slane %v260_v22, %v290_v63 }
 0x239   :  { %v347_v35 = vsel %vm292_vm3, %v346_v26, %v342_v31 }
 0x23a   :  { %v266_v36 = vpop.xlane.xlu1 %265  ;;  %v368_v42 = vsel %vm367_vm9, %v347_v35, %v366_v40 }
 0x23b   :  { %v355_v39 = vrot.slane %v266_v36, %v290_v63 }
 0x23d   :  { %v356_v41 = vsel %vm292_vm3, %v355_v39, %v351_v38 }
 0x23e   :  { %v370_v23 = vsel %vm369_vm10, %v356_v41, %v368_v42 }
 0x23f   :  { %v372_v43 = vmul.f32 %v597_v21, %v370_v23 }
 0x241   :  { %v373_v44 = vsel %vm70_vm0, %v372_v43, 0.0 }
 0x242   :  { %374 = vadd.xlane.f32.xlu0 %v373_v44 }
 0x2cf   :  { %v375_v45 = vpop.xlane.xlu0 %374 }
 0x2d0   :  { %v376_v46 = vmul.f32 0.5, %v375_v45 }
 0x2d2   :  { %v377_v47 = vadd.f32 %v376_v46, %v587_v10 }
 0x2d4   :  { %v378_v29 = vsub.f32 %v581_v0, %v377_v47 }
 0x2d6   :  { %v379_v49 = vmul.f32 %v378_v29, %v69_v48 }
 0x2d8   :  { %v380_v50 = vsel %vm70_vm0, %v379_v49, 0.0 }
 0x2d9   :  { %381 = vadd.xlane.f32.xlu1 %v380_v50 }
 0x366   :  { %v382_v51 = vpop.xlane.xlu1 %381 }
 0x367   :  { %v387_v21 = vrot.slane %v382_v51, %v656_v2 }
 0x369   :  { %390 = vst.msk [vmem:[#allocation8] sm:$0x1] %vm389_vm11, %v387_v21 }
 0x36a   :  { %500 = shalt.err (!%p497_p0)
}
 0x36b   :  { %s501_s26 = scalar_lea.hbm %s695_s3, 16 }
 0x36c   :  { %p502_p1 = scmp.ne.s32.totalorder %s695_s3, %s501_s26  ;;  %p505_p2 = scmp.lt.u32.totalorder %s501_s26, %s695_s3 }
 0x36e   :  { %p507_p3 = pnand %p505_p2, %p502_p1 }
 0x370   :  { %510 = shalt.err (!%p507_p3)
}
 0x371   :  { %400 = dma.vmem_to_hbm [thread:$0]  %s398_s21, 16, %s695_s3, [#allocation4]  }
 0x372   :  { %515 = dma.done.wait [#allocation4], 16  }
 0x373   :  { %516 = vsyncadd [#allocation4], 4294967280 }
 0x374   :  { %404 = vsyncpa [#allocation3], 1 }
 0x375   :  { %405 = vsyncpa [#allocation6], 1 }
 0x376   :  { %406 = vsyncpa [#allocation4], 1 }

</bundles_post_ra>
